<compile_context>
chip_gen: v7x
topology: tpu7x:2x2x1
jax: 0.10.0
libtpu: 0.0.40
codegen_flags: <defaults>
</compile_context>

<pallas_src>
import jax
import jax.numpy as jnp
from jax import lax
from jax.experimental import pallas as pl
from jax.experimental.pallas import tpu as pltpu


# ------------------------------- small helpers ------------------------------ #
def _nbytes(x):
    n = 1
    for s in x.shape:
        n *= int(s)
    return n * x.dtype.itemsize


def _vmem_limit(*xs):
    total = sum(_nbytes(x) for x in xs)
    return int(min(max(4 * total + (2 << 20), 4 << 20), 64 << 20))


def _pick_row_tile(rows):
    for t in (512, 256, 128):
        if rows % t == 0:
            return t
    return rows


# --------------------------------------------------------------------------- #
# Kernel A: folded one-hot embedding gather + hoisted input matmul (parallel)
# --------------------------------------------------------------------------- #
def _input_path_kernel(ids_ref, times_ref, wfold_ref, wt_ref, b_ref, pre_ref):
    # ids_ref  : (rows, N) int32  code ids already offset by n*T per column
    # times_ref: (rows, 1) f32    visit interval per row
    # wfold_ref: (N*T, G)  f32    table-folded input weights (G reordered)
    # wt_ref   : (1, G)    f32    interval column (kernel + recurrent)
    # b_ref    : (1, G)    f32    combined bias
    # pre_ref  : (rows, G) f32    output pre-activations
    rows, n_codes = ids_ref.shape
    nt = wfold_ref.shape[0]
    ids = ids_ref[...]
    col = lax.broadcasted_iota(jnp.int32, (rows, nt), 1)
    onehot = (col == ids[:, 0:1]).astype(jnp.float32)
    for n in range(1, n_codes):                      # static unroll, VPU compares
        onehot = onehot + (col == ids[:, n:n + 1]).astype(jnp.float32)
    pre_ref[...] = (jnp.dot(onehot, wfold_ref[...],
                            preferred_element_type=jnp.float32)
                    + times_ref[...] * wt_ref[...] + b_ref[...])


def stagenet_input_path(ids_off, times, wfold, wt, bias):
    rows, n_codes = ids_off.shape
    nt, G = wfold.shape
    tile = _pick_row_tile(rows)
    out_shape = jax.ShapeDtypeStruct((rows, G), jnp.float32)
    return pl.pallas_call(
        _input_path_kernel,
        out_shape=out_shape,
        grid=(rows // tile,),
        in_specs=[
            pl.BlockSpec((tile, n_codes), lambda i: (i, 0)),
            pl.BlockSpec((tile, 1), lambda i: (i, 0)),
            pl.BlockSpec((nt, G), lambda i: (0, 0)),
            pl.BlockSpec((1, G), lambda i: (0, 0)),
            pl.BlockSpec((1, G), lambda i: (0, 0)),
        ],
        out_specs=pl.BlockSpec((tile, G), lambda i: (i, 0)),
        compiler_params=pltpu.CompilerParams(
            dimension_semantics=("parallel",),
            vmem_limit_bytes=_vmem_limit(ids_off, times, wfold, wt, bias,
                                         out_shape)),
    )(ids_off, times, wfold, wt, bias)


# --------------------------------------------------------------------------- #
# Kernel B: serial recurrence (unrolled, single dense stores at the end)
# --------------------------------------------------------------------------- #
def _recurrence_kernel(pre_ref, wrh_ref, mexp_ref, h_all_ref, dist_ref):
    # pre_ref  : (V*B, G)    f32  time-major pre-activations (row = t*B + b)
    # wrh_ref  : (H, G)      f32  recurrent weight, G reordered [f|i|o|c|fm|im]
    # mexp_ref : (2L, 2H+1)  f32  pre-folded cumax / level-expansion matrix
    # h_all_ref: (V*B, H)    f32  all hidden states (time-major), single store
    # dist_ref : (B, V)      f32  1 - mean(f_master_gate), single store
    _, G = pre_ref.shape
    H = wrh_ref.shape[0]
    B, V = dist_ref.shape
    L = (G - 4 * H) // 2

    pre = pre_ref[...]
    wrh = wrh_ref[...]
    mexp = mexp_ref[...]

    def _softmax(z):
        m = jnp.max(z, axis=-1, keepdims=True)
        e = jnp.exp(z - m)
        return e / jnp.sum(e, axis=-1, keepdims=True)

    h = jnp.zeros((B, H), jnp.float32)
    c = jnp.zeros((B, H), jnp.float32)
    h_steps = []
    d_steps = []
    for t in range(V):      # static unroll: only the h-dependent dot is serial
        g = pre[t * B:(t + 1) * B, :] + jnp.dot(
            h, wrh, preferred_element_type=jnp.float32)          # (B, G)
        gates = g[:, :4 * H]                                     # one 128-lane block
        master = g[:, 4 * H:]
        sig = jax.nn.sigmoid(gates)                              # one EUP pass
        f_g = sig[:, 0 * H:1 * H]
        i_g = sig[:, 1 * H:2 * H]
        o_g = sig[:, 2 * H:3 * H]
        c_in = jnp.tanh(gates[:, 3 * H:4 * H])
        fm_s = _softmax(master[:, :L])
        im_s = _softmax(master[:, L:2 * L])
        # [FM | IM | mean_fm] in one small pre-folded dot (cumax + level expand)
        prod = jnp.dot(jnp.concatenate([fm_s, im_s], axis=1), mexp,
                       preferred_element_type=jnp.float32)       # (B, 2H+1)
        FM = prod[:, :H]
        IM = prod[:, H:2 * H]
        mean_fm = prod[:, 2 * H:2 * H + 1]
        OV = FM * IM
        c = OV * (f_g * c + i_g * c_in) + (FM - OV) * c + (IM - OV) * c_in
        h = o_g * jnp.tanh(c)
        h_steps.append(h)
        d_steps.append(1.0 - mean_fm)                            # (B, 1)

    h_all_ref[...] = jnp.concatenate(h_steps, axis=0)            # (V*B, H)
    dist_ref[...] = jnp.concatenate(d_steps, axis=1)             # (B, V)


def stagenet_recurrence(pre, wrh, mexp, *, V, B, H):
    vmem = pl.BlockSpec(memory_space=pltpu.MemorySpace.VMEM)
    out_shapes = (jax.ShapeDtypeStruct((V * B, H), jnp.float32),
                  jax.ShapeDtypeStruct((B, V), jnp.float32))
    return pl.pallas_call(
        _recurrence_kernel,
        out_shape=out_shapes,
        in_specs=[vmem, vmem, vmem],
        out_specs=(vmem, vmem),
        compiler_params=pltpu.CompilerParams(
            vmem_limit_bytes=_vmem_limit(pre, wrh, mexp, *out_shapes)),
    )(pre, wrh, mexp)


# --------------------------------------------------------------------------- #
# Kernel 2: fused sliding-window stage attention + theme scale/rescale +
#           Conv1d-as-flat-matmul + residual + lane-padded output head.
#           Grid is parallel over the batch; windows are built in-kernel so no
#           (B, V, cs, H) tensor is materialized in HBM.
# --------------------------------------------------------------------------- #
def _post_kernel(h_ref, d_ref, ws_ref, bs_ref, wrs_ref, brs_ref,
                 wc_ref, bc_ref, wo_ref, bo_ref, o_ref):
    # h_ref: (1, V, H); d_ref: (1, V, 1); o_ref: (1, V, OUT_PAD)
    h = h_ref[0]                                     # (V, H)
    d = d_ref[0]                                     # (V, 1)
    V, H = h.shape
    cs = wc_ref.shape[0] // H

    # sliding windows (oldest -> newest), zero-padded history
    h_pad = jnp.concatenate([jnp.zeros((cs - 1, H), jnp.float32), h], axis=0)
    d_pad = jnp.concatenate([jnp.zeros((cs - 1, 1), jnp.float32), d], axis=0)
    h_win = [h_pad[k:k + V, :] for k in range(cs)]
    d_win = [d_pad[k:k + V, :] for k in range(cs)]

    # cumsum along the window (static), then softmax across the window per visit
    cum = []
    run = jnp.zeros((V, 1), jnp.float32)
    for k in range(cs):
        run = run + d_win[k]
        cum.append(run)
    m = cum[0]
    for k in range(1, cs):
        m = jnp.maximum(m, cum[k])
    e = [jnp.exp(cum[k] - m) for k in range(cs)]
    den = e[0]
    for k in range(1, cs):
        den = den + e[k]
    weighted = [h_win[k] * (e[k] / den) for k in range(cs)]      # (V, H) each

    theme_in = weighted[0]
    for k in range(1, cs):
        theme_in = theme_in + weighted[k]
    theme_in = theme_in * (1.0 / cs)                             # mean over window
    conv_in = jnp.concatenate(weighted, axis=1)                  # (V, cs*H) k-major

    t1 = jnp.maximum(
        jnp.dot(theme_in, ws_ref[...],
                preferred_element_type=jnp.float32) + bs_ref[...], 0.0)
    theme = jax.nn.sigmoid(
        jnp.dot(t1, wrs_ref[...], preferred_element_type=jnp.float32)
        + brs_ref[...])
    conv = jnp.dot(conv_in, wc_ref[...],
                   preferred_element_type=jnp.float32) + bc_ref[...]
    rnn = theme * conv + h                                       # residual (origin_h)
    o_ref[0] = (jnp.dot(rnn, wo_ref[...],
                        preferred_element_type=jnp.float32) + bo_ref[...])


def stagenet_post(h_all, dist3, ws, bs, wrs, brs, wc, bc, wo_pad, bo_pad):
    B, V, H = h_all.shape
    HK = wc.shape[0]
    H6P = ws.shape[1]
    OP = wo_pad.shape[1]
    rep2 = lambda b: (0, 0)
    row3 = lambda b: (b, 0, 0)
    out_shape = jax.ShapeDtypeStruct((B, V, OP), jnp.float32)
    return pl.pallas_call(
        _post_kernel,
        out_shape=out_shape,
        grid=(B,),
        in_specs=[
            pl.BlockSpec((1, V, H), row3),      # hidden states per batch
            pl.BlockSpec((1, V, 1), row3),      # distances per batch
            pl.BlockSpec((H, H6P), rep2),       # nn_scale W (padded)
            pl.BlockSpec((1, H6P), rep2),
            pl.BlockSpec((H6P, H), rep2),       # nn_rescale W (padded)
            pl.BlockSpec((1, H), rep2),
            pl.BlockSpec((HK, H), rep2),        # conv W (flattened, k-major)
            pl.BlockSpec((1, H), rep2),
            pl.BlockSpec((H, OP), rep2),        # output head W (lane-padded)
            pl.BlockSpec((1, OP), rep2),
        ],
        out_specs=pl.BlockSpec((1, V, OP), row3),
        compiler_params=pltpu.CompilerParams(
            dimension_semantics=("parallel",),
            vmem_limit_bytes=_vmem_limit(h_all, dist3, ws, bs, wrs, brs,
                                         wc, bc, wo_pad, bo_pad, out_shape)),
    )(h_all, dist3, ws, bs, wrs, brs, wc, bc, wo_pad, bo_pad)


# ------------------------------ parameter init ------------------------------ #
def init_params(key, *, num_nodes, input_dim, code_num, hidden, levels,
                conv_size, out_dim):
    assert hidden % levels == 0
    G = 4 * hidden + 2 * levels
    h6 = hidden // 6
    ks = jax.random.split(key, 8)

    def glorot(k, shape):
        lim = (6.0 / (shape[0] + shape[1])) ** 0.5
        return jax.random.uniform(k, shape, jnp.float32, -lim, lim)

    p = {}
    emb = jax.random.normal(ks[0], (num_nodes + 1, input_dim), jnp.float32) * 0.1
    p['node_embed'] = emb.at[0].set(0.0)                   # padding row (idx 0)
    # Torch column layout: [fm (L) | im (L) | f (H) | i (H) | o (H) | c (H)]
    p['kernel_w'] = glorot(ks[1], (input_dim * code_num + 1, G))   # (in, out)
    p['kernel_b'] = jnp.zeros((G,), jnp.float32)
    p['rec_w'] = glorot(ks[2], (hidden + 1, G))
    p['rec_b'] = jnp.zeros((G,), jnp.float32)
    p['scale_w'] = glorot(ks[3], (hidden, h6))
    p['scale_b'] = jnp.zeros((h6,), jnp.float32)
    p['rescale_w'] = glorot(ks[4], (h6, hidden))
    p['rescale_b'] = jnp.zeros((hidden,), jnp.float32)
    p['conv_w'] = (jax.random.normal(ks[5], (hidden, hidden, conv_size),
                                     jnp.float32)
                   * (1.0 / (hidden * conv_size)) ** 0.5)  # (O, C, K) torch layout
    p['conv_b'] = jnp.zeros((hidden,), jnp.float32)
    p['out_w'] = glorot(ks[6], (hidden, out_dim))
    p['out_b'] = jnp.zeros((out_dim,), jnp.float32)
    return p


# ------------------------------- forward pass ------------------------------- #
def stagenet_forward(params, node_ids, edge_idx, edge_attr, visit_times,
                     visit_order, attn_mask, *, conv_size):
    del edge_idx, edge_attr, visit_order        # unused in the reference forward
    B, V, N = node_ids.shape
    table = params['node_embed'].astype(jnp.float32)          # (T, D)
    T, D = table.shape
    H = params['rec_w'].shape[0] - 1
    G = params['rec_w'].shape[1]
    out_dim = params['out_w'].shape[1]
    L = (G - 4 * H) // 2
    chunk = H // L
    cs = conv_size

    # ---- weight prep (pure layout work, cheap one-time XLA) -----------------
    # reorder G columns: [fm|im|f|i|o|c] -> [f|i|o|c|fm|im] (gate block = 1 vreg)
    perm = jnp.concatenate([jnp.arange(2 * L, G), jnp.arange(0, 2 * L)])
    kw = params['kernel_w'][:, perm]
    rw = params['rec_w'][:, perm]
    wkx = kw[:N * D]                                          # input part
    wt = kw[N * D:N * D + 1] + rw[H:H + 1]                    # fused interval col
    wrh = rw[:H]
    bias = (params['kernel_b'] + params['rec_b'])[perm].reshape(1, G)

    # fold the embedding table into the input weights: one (N*T, G) matrix
    wfold = jnp.concatenate(
        [table @ wkx[n * D:(n + 1) * D] for n in range(N)], axis=0)

    # pre-folded cumax / level expansion: [fm_s|im_s] @ MEXP = [FM | IM | mean_fm]
    li = jnp.arange(L)[:, None]
    lev = (jnp.arange(H)[None, :]) // chunk
    FME = (lev >= li).astype(jnp.float32)                     # l2r cumsum + expand
    IME = (li >= lev).astype(jnp.float32)                     # r2l cumsum + expand
    mcol = ((L - jnp.arange(L, dtype=jnp.float32)) / L)[:, None]
    mexp = jnp.zeros((2 * L, 2 * H + 1), jnp.float32)
    mexp = mexp.at[:L, :H].set(FME)
    mexp = mexp.at[:L, 2 * H:].set(mcol)
    mexp = mexp.at[L:, H:2 * H].set(IME)

    # ---- kernel A: folded one-hot gather + input matmul (parallel rows) -----
    ids_tm = jnp.transpose(node_ids.astype(jnp.int32), (1, 0, 2)).reshape(V * B, N)
    ids_off = ids_tm + (jnp.arange(N, dtype=jnp.int32) * T)[None, :]
    times_tm = jnp.transpose(visit_times.astype(jnp.float32), (1, 0)).reshape(V * B, 1)
    pre = stagenet_input_path(ids_off, times_tm, wfold, wt, bias)

    # ---- kernel B: serial recurrence (unrolled, dense single stores) --------
    h_tm, dist = stagenet_recurrence(pre, wrh, mexp, V=V, B=B, H=H)
    h_all = jnp.transpose(h_tm.reshape(V, B, H), (1, 0, 2))   # (B, V, H)

    # ---- kernel 2: fused window attention + theme + conv + residual + head --
    h6 = params['scale_w'].shape[1]
    H6P = max(8, -(-h6 // 8) * 8)       # pad H//6 bottleneck (exact: relu(0)=0)
    ws = jnp.zeros((H, H6P), jnp.float32).at[:, :h6].set(params['scale_w'])
    bs = jnp.zeros((1, H6P), jnp.float32).at[0, :h6].set(params['scale_b'])
    wrs = jnp.zeros((H6P, H), jnp.float32).at[:h6, :].set(params['rescale_w'])
    brs = params['rescale_b'].reshape(1, H)
    # Conv1d(hidden->conv_dim, kernel=cs over the full window) == flat matmul;
    # rows ordered window-position-major to match the in-kernel concat.
    wc = jnp.transpose(params['conv_w'], (2, 1, 0)).reshape(cs * H, H)
    bc = params['conv_b'].reshape(1, H)
    OUT_PAD = 128                        # lane-dense head: pad out_dim -> 128
    wo_pad = jnp.zeros((H, OUT_PAD), jnp.float32).at[:, :out_dim].set(params['out_w'])
    bo_pad = jnp.zeros((1, OUT_PAD), jnp.float32).at[0, :out_dim].set(params['out_b'])

    out_pad = stagenet_post(h_all, dist[..., None], ws, bs, wrs, brs,
                            wc, bc, wo_pad, bo_pad)
    output = out_pad[..., :out_dim]                            # (B, V, out_dim)

    # pick the last valid visit per patient
    visit_mask = jnp.logical_not(jnp.all(attn_mask, axis=-1)).astype(jnp.int32)
    last_idx = jnp.sum(visit_mask, axis=-1) - 1
    logits = output[jnp.arange(B), last_idx]
    return {'logits': [logits], 'prototypes': None, 'embeddings': None,
            'scores': None}


# ---------------------------------- main ------------------------------------ #
if __name__ == "__main__":
    NUM_NODES = 50          # args['num_nodes']
    V = 8                   # args['visit_thresh']
    N = 8                   # args['visit_code_num']
    INPUT_DIM = 16          # args['input_dim'] == node embedding dim
    HIDDEN = 32             # args['hidden_dim'] == conv_dim
    LEVELS = 4              # args['levels']  (hidden % levels == 0)
    CONV_SIZE = 4           # args['conv_size']
    OUT_DIM = 4             # args['out_dim']
    B = 2

    key = jax.random.PRNGKey(0)
    k_param, k_ids = jax.random.split(key, 2)
    params = init_params(k_param, num_nodes=NUM_NODES, input_dim=INPUT_DIM,
                         code_num=N, hidden=HIDDEN, levels=LEVELS,
                         conv_size=CONV_SIZE, out_dim=OUT_DIM)

    # node_ids: valid visits hold random codes in [1, NUM_NODES]; padded = 0
    valid_visits = jnp.array([6, 4], dtype=jnp.int32)
    raw_ids = jax.random.randint(k_ids, (B, V, N), 1, NUM_NODES + 1,
                                 dtype=jnp.int32)
    visit_valid = jnp.arange(V)[None, :] < valid_visits[:, None]
    node_ids = jnp.where(visit_valid[:, :, None], raw_ids, 0)
    attn_mask = node_ids == 0                                  # True == masked code

    visit_times = jnp.tile(jnp.arange(V, dtype=jnp.int32)[None, :], (B, 1))
    visit_order = visit_times
    edge_idx = jnp.zeros((2, 20), jnp.int32)                   # unused in forward
    edge_attr = jnp.ones((20,), jnp.float32)                   # unused in forward

    out = stagenet_forward(params, node_ids, edge_idx, edge_attr, visit_times,
                           visit_order, attn_mask, conv_size=CONV_SIZE)

    logits = jax.block_until_ready(out['logits'][0])
    assert logits.shape == (B, OUT_DIM)
    assert bool(jnp.all(jnp.isfinite(logits)))
    print("KERNEL_OK")
</pallas_src>

<mosaic_0001>
module attributes {stable_mosaic.version = 11 : i64} {
  func.func @_input_path_kernel(%arg0: i32, %arg1: memref<16x8xi32, #tpu.memory_space<vmem>>, %arg2: memref<16x1xf32, #tpu.memory_space<vmem>>, %arg3: memref<408x136xf32, #tpu.memory_space<vmem>>, %arg4: memref<1x136xf32, #tpu.memory_space<vmem>>, %arg5: memref<1x136xf32, #tpu.memory_space<vmem>>, %arg6: memref<16x136xf32, #tpu.memory_space<vmem>>) attributes {dimension_semantics = [#tpu.dimension_semantics<parallel>], iteration_bounds = array<i64: 1>, scalar_prefetch = 0 : i64, scratch_operands = 0 : i64, tpu.core_type = #tpu.core_type<tc>, window_params = [{transform_indices = @transform_0, window_bounds = array<i64: 16, 8>}, {transform_indices = @transform_1, window_bounds = array<i64: 16, 1>}, {pipeline_mode = #tpu.pipeline_mode<synchronous>, transform_indices = @transform_2, window_bounds = array<i64: 408, 136>}, {pipeline_mode = #tpu.pipeline_mode<synchronous>, transform_indices = @transform_3, window_bounds = array<i64: 1, 136>}, {pipeline_mode = #tpu.pipeline_mode<synchronous>, transform_indices = @transform_4, window_bounds = array<i64: 1, 136>}, {transform_indices = @transform_5, window_bounds = array<i64: 16, 136>}]} {
    %c0 = arith.constant 0 : index
    %c0_0 = arith.constant 0 : index
    %0 = vector.load %arg1[%c0, %c0_0] : memref<16x8xi32, #tpu.memory_space<vmem>>, vector<16x8xi32>
    %1 = tpu.iota {dimensions = array<i32: 1>} : vector<16x408xi32>
    %2 = vector.extract_strided_slice %0 {offsets = [0, 0], sizes = [16, 1], strides = [1, 1]} : vector<16x8xi32> to vector<16x1xi32>
    %3 = vector.broadcast %2 : vector<16x1xi32> to vector<16x408xi32>
    %4 = arith.cmpi eq, %1, %3 : vector<16x408xi32>
    %5 = arith.extui %4 : vector<16x408xi1> to vector<16x408xi32>
    %6 = arith.sitofp %5 : vector<16x408xi32> to vector<16x408xf32>
    %7 = vector.extract_strided_slice %0 {offsets = [0, 1], sizes = [16, 1], strides = [1, 1]} : vector<16x8xi32> to vector<16x1xi32>
    %8 = vector.broadcast %7 : vector<16x1xi32> to vector<16x408xi32>
    %9 = arith.cmpi eq, %1, %8 : vector<16x408xi32>
    %10 = arith.extui %9 : vector<16x408xi1> to vector<16x408xi32>
    %11 = arith.sitofp %10 : vector<16x408xi32> to vector<16x408xf32>
    %12 = arith.addf %6, %11 : vector<16x408xf32>
    %13 = vector.extract_strided_slice %0 {offsets = [0, 2], sizes = [16, 1], strides = [1, 1]} : vector<16x8xi32> to vector<16x1xi32>
    %14 = vector.broadcast %13 : vector<16x1xi32> to vector<16x408xi32>
    %15 = arith.cmpi eq, %1, %14 : vector<16x408xi32>
    %16 = arith.extui %15 : vector<16x408xi1> to vector<16x408xi32>
    %17 = arith.sitofp %16 : vector<16x408xi32> to vector<16x408xf32>
    %18 = arith.addf %12, %17 : vector<16x408xf32>
    %19 = vector.extract_strided_slice %0 {offsets = [0, 3], sizes = [16, 1], strides = [1, 1]} : vector<16x8xi32> to vector<16x1xi32>
    %20 = vector.broadcast %19 : vector<16x1xi32> to vector<16x408xi32>
    %21 = arith.cmpi eq, %1, %20 : vector<16x408xi32>
    %22 = arith.extui %21 : vector<16x408xi1> to vector<16x408xi32>
    %23 = arith.sitofp %22 : vector<16x408xi32> to vector<16x408xf32>
    %24 = arith.addf %18, %23 : vector<16x408xf32>
    %25 = vector.extract_strided_slice %0 {offsets = [0, 4], sizes = [16, 1], strides = [1, 1]} : vector<16x8xi32> to vector<16x1xi32>
    %26 = vector.broadcast %25 : vector<16x1xi32> to vector<16x408xi32>
    %27 = arith.cmpi eq, %1, %26 : vector<16x408xi32>
    %28 = arith.extui %27 : vector<16x408xi1> to vector<16x408xi32>
    %29 = arith.sitofp %28 : vector<16x408xi32> to vector<16x408xf32>
    %30 = arith.addf %24, %29 : vector<16x408xf32>
    %31 = vector.extract_strided_slice %0 {offsets = [0, 5], sizes = [16, 1], strides = [1, 1]} : vector<16x8xi32> to vector<16x1xi32>
    %32 = vector.broadcast %31 : vector<16x1xi32> to vector<16x408xi32>
    %33 = arith.cmpi eq, %1, %32 : vector<16x408xi32>
    %34 = arith.extui %33 : vector<16x408xi1> to vector<16x408xi32>
    %35 = arith.sitofp %34 : vector<16x408xi32> to vector<16x408xf32>
    %36 = arith.addf %30, %35 : vector<16x408xf32>
    %37 = vector.extract_strided_slice %0 {offsets = [0, 6], sizes = [16, 1], strides = [1, 1]} : vector<16x8xi32> to vector<16x1xi32>
    %38 = vector.broadcast %37 : vector<16x1xi32> to vector<16x408xi32>
    %39 = arith.cmpi eq, %1, %38 : vector<16x408xi32>
    %40 = arith.extui %39 : vector<16x408xi1> to vector<16x408xi32>
    %41 = arith.sitofp %40 : vector<16x408xi32> to vector<16x408xf32>
    %42 = arith.addf %36, %41 : vector<16x408xf32>
    %43 = vector.extract_strided_slice %0 {offsets = [0, 7], sizes = [16, 1], strides = [1, 1]} : vector<16x8xi32> to vector<16x1xi32>
    %44 = vector.broadcast %43 : vector<16x1xi32> to vector<16x408xi32>
    %45 = arith.cmpi eq, %1, %44 : vector<16x408xi32>
    %46 = arith.extui %45 : vector<16x408xi1> to vector<16x408xi32>
    %47 = arith.sitofp %46 : vector<16x408xi32> to vector<16x408xf32>
    %48 = arith.addf %42, %47 : vector<16x408xf32>
    %c0_1 = arith.constant 0 : index
    %c0_2 = arith.constant 0 : index
    %49 = vector.load %arg3[%c0_1, %c0_2] : memref<408x136xf32, #tpu.memory_space<vmem>>, vector<408x136xf32>
    %cst = arith.constant dense<0.000000e+00> : vector<16x136xf32>
    %50 = tpu.matmul %48, %49, %cst {dimension_numbers = #tpu.dot_dimension_numbers<[1], [0], [0], [1], [0, 0, 1, 1], [], []>} : vector<16x408xf32>, vector<408x136xf32>, vector<16x136xf32> -> vector<16x136xf32>
    %c0_3 = arith.constant 0 : index
    %c0_4 = arith.constant 0 : index
    %51 = vector.load %arg2[%c0_3, %c0_4] : memref<16x1xf32, #tpu.memory_space<vmem>>, vector<16x1xf32>
    %c0_5 = arith.constant 0 : index
    %c0_6 = arith.constant 0 : index
    %52 = vector.load %arg4[%c0_5, %c0_6] : memref<1x136xf32, #tpu.memory_space<vmem>>, vector<1x136xf32>
    %53 = vector.broadcast %51 : vector<16x1xf32> to vector<16x136xf32>
    %54 = vector.broadcast %52 : vector<1x136xf32> to vector<16x136xf32>
    %55 = arith.mulf %53, %54 : vector<16x136xf32>
    %56 = arith.addf %50, %55 : vector<16x136xf32>
    %c0_7 = arith.constant 0 : index
    %c0_8 = arith.constant 0 : index
    %57 = vector.load %arg5[%c0_7, %c0_8] : memref<1x136xf32, #tpu.memory_space<vmem>>, vector<1x136xf32>
    %58 = vector.broadcast %57 : vector<1x136xf32> to vector<16x136xf32>
    %59 = arith.addf %56, %58 : vector<16x136xf32>
    %c0_9 = arith.constant 0 : index
    %c0_10 = arith.constant 0 : index
    %60 = vector.load %arg6[%c0_9, %c0_10] : memref<16x136xf32, #tpu.memory_space<vmem>>, vector<16x136xf32>
    tpu.vector_store %arg6[%c0_9, %c0_10], %59 {strides = array<i32>} : memref<16x136xf32, #tpu.memory_space<vmem>>, vector<16x136xf32>,
    return
  }
  func.func @transform_0(%arg0: i32) -> (i32, i32) {
    %c0_i32 = arith.constant 0 : i32
    %c0_i32_0 = arith.constant 0 : i32
    return %arg0, %c0_i32 : i32, i32
  }
  func.func @transform_1(%arg0: i32) -> (i32, i32) {
    %c0_i32 = arith.constant 0 : i32
    %c0_i32_0 = arith.constant 0 : i32
    return %arg0, %c0_i32 : i32, i32
  }
  func.func @transform_2(%arg0: i32) -> (i32, i32) {
    %c0_i32 = arith.constant 0 : i32
    %c0_i32_0 = arith.constant 0 : i32
    %c0_i32_1 = arith.constant 0 : i32
    return %c0_i32, %c0_i32_0 : i32, i32
  }
  func.func @transform_3(%arg0: i32) -> (i32, i32) {
    %c0_i32 = arith.constant 0 : i32
    %c0_i32_0 = arith.constant 0 : i32
    %c0_i32_1 = arith.constant 0 : i32
    return %c0_i32, %c0_i32_0 : i32, i32
  }
  func.func @transform_4(%arg0: i32) -> (i32, i32) {
    %c0_i32 = arith.constant 0 : i32
    %c0_i32_0 = arith.constant 0 : i32
    %c0_i32_1 = arith.constant 0 : i32
    return %c0_i32, %c0_i32_0 : i32, i32
  }
  func.func @transform_5(%arg0: i32) -> (i32, i32) {
    %c0_i32 = arith.constant 0 : i32
    %c0_i32_0 = arith.constant 0 : i32
    return %arg0, %c0_i32 : i32, i32
  }
}

</mosaic_0001>

<bundles_post_ra>
// kernel: tpu_custom_call.1
= control target key start
LH: loop header
LB: loop body
LE: loop exit
PB: predicated region body
PF: predicated region fallthrough
CT: control target
= control target key end

     0   :  { %v879_v1 = vmov 2   ;;  %v880_v2 = vmov 0   ;;  %v881_v18 = vmov 1   ;;  %v882_v31 = vmov 3   ;;  %s1447_s0 = inlined_call_operand.vmem [shape: s32[16,8], index: 0, kind: input, shape index: {}]   ;;  %s1448_s1 = inlined_call_operand.vmem [shape: f32[16,1], index: 1, kind: input, shape index: {}]   ;;  %s1449_s2 = inlined_call_operand.vmem [shape: f32[408,136], index: 2, kind: input, shape index: {}]   ;;  %s1450_s3 = inlined_call_operand.vmem [shape: f32[1,136], index: 3, kind: input, shape index: {}]   ;;  %s1451_s4 = inlined_call_operand.vmem [shape: f32[1,136], index: 4, kind: input, shape index: {}]   ;;  %s1452_s5 = inlined_call_operand.hbm [shape: f32[16,136], index: 5, kind: output, shape index: {}]  }
   0x1   :  { %v924_v0 = vld [vmem:[%s1447_s0] sm:$0xff]  ;;  %840 = vset.pattern.permute.xlu1 %v879_v1  ;;  %838 = vset.pattern.permute.xlu0 %v880_v2  ;;  %v325_v3 = vld [vmem:[%s1449_s2 + $0x8] sm:$0xff]  ;;  %v327_v4 = vld [vmem:[%s1449_s2 + $0x18] sm:$0xff]  ;;  %v883_v59 = vmov 4  }
   0x2   :  { %97 = vperm.xlu1 %840, %v924_v0   ;;  %29 = vperm.xlu0 %838, %v924_v0   ;;  %v718_v5 = vpack.c.bf16 %v327_v4, %v325_v3  ;;  %v324_v6 = vld [vmem:[%s1449_s2] sm:$0xff]  ;;  %v326_v7 = vld [vmem:[%s1449_s2 + $0x10] sm:$0xff]  ;;  %v329_v8 = vld [vmem:[%s1449_s2 + $0x28] sm:$0xff] }
   0x3   :  { %v720_v9 = vpack.c.bf16 %v326_v7, %v324_v6  ;;  %v331_v10 = vld [vmem:[%s1449_s2 + $0x38] sm:$0xff]  ;;  %v328_v11 = vld [vmem:[%s1449_s2 + $0x20] sm:$0xff]  ;;  %v330_v12 = vld [vmem:[%s1449_s2 + $0x30] sm:$0xff] }
   0x4   :  { %v957_v13 = vld [vmem:[%s1447_s0 + $0x8] sm:$0xff]  ;;  %719 = vmatprep.subr.bf16.mxu1 %v718_v5  ;;  %v722_v14 = vpack.c.bf16 %v331_v10, %v329_v8  ;;  %v335_v16 = vld [vmem:[%s1449_s2 + $0x58] sm:$0xff]  ;;  %v724_v17 = vpack.c.bf16 %v330_v12, %v328_v11  ;;  %v332_v20 = vld [vmem:[%s1449_s2 + $0x40] sm:$0xff] }
   0x5   :  { %v333_v15 = vld [vmem:[%s1449_s2 + $0x48] sm:$0xff]  ;;  %721 = vmatpush1.bf16.msra.mxu1 %v720_v9  ;;  %v334_v21 = vld [vmem:[%s1449_s2 + $0x50] sm:$0xff]  ;;  %v339_v23 = vld [vmem:[%s1449_s2 + $0x78] sm:$0xff] }
   0x6   :  { %841 = vset.pattern.permute.xlu1 %v880_v2  ;;  %839 = vset.pattern.permute.xlu0 %v881_v18  ;;  %v726_v19 = vpack.c.bf16 %v335_v16, %v333_v15  ;;  %v337_v22 = vld [vmem:[%s1449_s2 + $0x68] sm:$0xff]  ;;  %v728_v24 = vpack.c.bf16 %v334_v21, %v332_v20  ;;  %v336_v25 = vld [vmem:[%s1449_s2 + $0x60] sm:$0xff]  ;;  %v338_v26 = vld [vmem:[%s1449_s2 + $0x70] sm:$0xff] }
   0x7   :  { %32 = vperm.xlu1 %841, %v957_v13   ;;  %59 = vperm.xlu0 %839, %v924_v0   ;;  %v730_v27 = vpack.c.bf16 %v339_v23, %v337_v22  ;;  %v341_v28 = vld [vmem:[%s1449_s2 + $0x88] sm:$0xff]  ;;  %v343_v29 = vld [vmem:[%s1449_s2 + $0x98] sm:$0xff]  ;;  %v388_v33 = vld [vmem:[%s1449_s2 + $0x200] sm:$0xff]  ;;  %v732_v37 = vpack.c.bf16 %v338_v26, %v336_v25 }
   0x8   :  { %723 = vmatprep.subr.bf16.mxu1 %v722_v14  ;;  %v389_v30 = vld [vmem:[%s1449_s2 + $0x208] sm:$0xff]  ;;  %v391_v32 = vld [vmem:[%s1449_s2 + $0x218] sm:$0xff]  ;;  %v390_v34 = vld [vmem:[%s1449_s2 + $0x210] sm:$0xff]  ;;  %v734_v40 = vpack.c.bf16 %v343_v29, %v341_v28 }
   0x9   :  { %725 = vmatpush1.bf16.msra.mxu1 %v724_v17  ;;  %v782_v35 = vpack.c.bf16 %v391_v32, %v389_v30  ;;  %v784_v36 = vpack.c.bf16 %v390_v34, %v388_v33  ;;  %v393_v38 = vld [vmem:[%s1449_s2 + $0x228] sm:$0xff]  ;;  %v395_v39 = vld [vmem:[%s1449_s2 + $0x238] sm:$0xff]  ;;  %v340_v41 = vld [vmem:[%s1449_s2 + $0x80] sm:$0xff] }
   0xa   :  { %727 = vmatprep.subr.bf16.mxu1 %v726_v19  ;;  %v786_v42 = vpack.c.bf16 %v395_v39, %v393_v38  ;;  %v392_v43 = vld [vmem:[%s1449_s2 + $0x220] sm:$0xff]  ;;  %v394_v44 = vld [vmem:[%s1449_s2 + $0x230] sm:$0xff]  ;;  %v345_v46 = vld [vmem:[%s1449_s2 + $0xa8] sm:$0xff] }
   0xb   :  { %842 = vset.pattern.permute.xlu1 %v881_v18  ;;  %843 = vset.pattern.permute.xlu0 %v882_v31  ;;  %v342_v45 = vld [vmem:[%s1449_s2 + $0x90] sm:$0xff]  ;;  %v347_v47 = vld [vmem:[%s1449_s2 + $0xb8] sm:$0xff]  ;;  %v788_v48 = vpack.c.bf16 %v394_v44, %v392_v43  ;;  %v397_v49 = vld [vmem:[%s1449_s2 + $0x248] sm:$0xff] }
   0xc   :  { %62 = vperm.xlu1 %842, %v957_v13   ;;  %135 = vperm.xlu0 %843, %v924_v0   ;;  %v399_v50 = vld [vmem:[%s1449_s2 + $0x258] sm:$0xff]  ;;  %v396_v51 = vld [vmem:[%s1449_s2 + $0x240] sm:$0xff]  ;;  %v398_v53 = vld [vmem:[%s1449_s2 + $0x250] sm:$0xff]  ;;  %v736_v54 = vpack.c.bf16 %v342_v45, %v340_v41  ;;  %v738_v56 = vpack.c.bf16 %v347_v47, %v345_v46 }
   0xd   :  { %729 = vmatpush1.bf16.msra.mxu1 %v728_v24  ;;  %783 = vmatprep.subr.bf16.mxu0 %v782_v35  ;;  %v790_v52 = vpack.c.bf16 %v399_v50, %v397_v49  ;;  %v401_v55 = vld [vmem:[%s1449_s2 + $0x268] sm:$0xff]  ;;  %v792_v57 = vpack.c.bf16 %v398_v53, %v396_v51  ;;  %v403_v58 = vld [vmem:[%s1449_s2 + $0x278] sm:$0xff]  ;;  %v344_v60 = vld [vmem:[%s1449_s2 + $0xa0] sm:$0xff] }
   0xe   :  { %731 = vmatprep.subr.bf16.mxu1 %v730_v27  ;;  %785 = vmatpush1.bf16.msra.mxu0 %v784_v36  ;;  %v346_v61 = vld [vmem:[%s1449_s2 + $0xb0] sm:$0xff]  ;;  %v349_v62 = vld [vmem:[%s1449_s2 + $0xc8] sm:$0xff]  ;;  %v794_v63 = vpack.c.bf16 %v403_v58, %v401_v55  ;;  %v400_v3 = vld [vmem:[%s1449_s2 + $0x260] sm:$0xff] }
   0xf   :  { %787 = vmatprep.subr.bf16.mxu0 %v786_v42  ;;  %v402_v4 = vld [vmem:[%s1449_s2 + $0x270] sm:$0xff]  ;;  %v405_v5 = vld [vmem:[%s1449_s2 + $0x288] sm:$0xff]  ;;  %v407_v6 = vld [vmem:[%s1449_s2 + $0x298] sm:$0xff]  ;;  %v740_v7 = vpack.c.bf16 %v346_v61, %v344_v60 }
  0x10   :  { %844 = vset.pattern.permute.xlu1 %v879_v1  ;;  %138 = vperm.xlu0 %843, %v957_v13   ;;  %v351_v1 = vld [vmem:[%s1449_s2 + $0xd8] sm:$0xff]  ;;  %v348_v9 = vld [vmem:[%s1449_s2 + $0xc0] sm:$0xff]  ;;  %v350_v10 = vld [vmem:[%s1449_s2 + $0xd0] sm:$0xff]  ;;  %v796_v11 = vpack.c.bf16 %v402_v4, %v400_v3 }
  0x11   :  { %100 = vperm.xlu1 %844, %v957_v13   ;;  %733 = vmatpush1.bf16.msra.mxu1 %v732_v37  ;;  %v742_v8 = vpack.c.bf16 %v351_v1, %v349_v62 }
  0x12   :  { %735 = vmatprep.subr.bf16.mxu1 %v734_v40  ;;  %789 = vmatpush1.bf16.msra.mxu0 %v788_v48 }
  0x13   :  { %791 = vmatprep.subr.bf16.mxu0 %v790_v52 }
  0x14   :  { %847 = vset.pattern.permute.xlu0 %v883_v59 }
  0x15   :  { %845 = vset.pattern.permute.xlu1 %v883_v59  ;;  %176 = vperm.xlu0 %847, %v957_v13  }
  0x16   :  { %173 = vperm.xlu1 %845, %v924_v0   ;;  %737 = vmatpush1.bf16.msra.mxu1 %v736_v54 }
  0x17   :  { %739 = vmatprep.subr.bf16.mxu1 %v738_v56  ;;  %793 = vmatpush1.bf16.msra.mxu0 %v792_v57 }
  0x18   :  { %795 = vmatprep.subr.bf16.mxu0 %v794_v63 }
  0x19   :  { %10 = vsyncpa [#allocation3], 0  ;;  %v884_v12 = vmov 7   ;;  %v353_v14 = vld [vmem:[%s1449_s2 + $0xe8] sm:$0xff]  ;;  %v355_v15 = vld [vmem:[%s1449_s2 + $0xf8] sm:$0xff]  ;;  %v798_v16 = vpack.c.bf16 %v407_v6, %v405_v5  ;;  %v885_v17 = vmov 5   ;;  %v744_v20 = vpack.c.bf16 %v350_v10, %v348_v9 }
  0x1a   :  { %850 = vset.pattern.permute.xlu0 %v884_v12  ;;  %846 = vset.pattern.permute.xlu1 %v885_v17  ;;  %v404_v18 = vld [vmem:[%s1449_s2 + $0x280] sm:$0xff]  ;;  %v406_v19 = vld [vmem:[%s1449_s2 + $0x290] sm:$0xff]  ;;  %v409_v21 = vld [vmem:[%s1449_s2 + $0x2a8] sm:$0xff]  ;;  %v746_v23 = vpack.c.bf16 %v355_v15, %v353_v14  ;;  %v886_v32 = vmov 6  }
  0x1b   :  { %287 = vperm.xlu0 %850, %v924_v0   ;;  %211 = vperm.xlu1 %846, %v924_v0   ;;  %v411_v22 = vld [vmem:[%s1449_s2 + $0x2b8] sm:$0xff]  ;;  %v352_v24 = vld [vmem:[%s1449_s2 + $0xe0] sm:$0xff]  ;;  %v354_v25 = vld [vmem:[%s1449_s2 + $0xf0] sm:$0xff]  ;;  %v800_v28 = vpack.c.bf16 %v406_v19, %v404_v18 }
  0x1c   :  { %741 = vmatpush1.bf16.msra.mxu1 %v740_v7  ;;  %797 = vmatpush1.bf16.msra.mxu0 %v796_v11  ;;  %v357_v26 = vld [vmem:[%s1449_s2 + $0x108] sm:$0xff]  ;;  %v359_v27 = vld [vmem:[%s1449_s2 + $0x118] sm:$0xff]  ;;  %v802_v29 = vpack.c.bf16 %v411_v22, %v409_v21  ;;  %v408_v30 = vld [vmem:[%s1449_s2 + $0x2a0] sm:$0xff]  ;;  %v748_v33 = vpack.c.bf16 %v354_v25, %v352_v24 }
  0x1d   :  { %743 = vmatprep.subr.bf16.mxu1 %v742_v8  ;;  %799 = vmatprep.subr.bf16.mxu0 %v798_v16  ;;  %v410_v31 = vld [vmem:[%s1449_s2 + $0x2b0] sm:$0xff]  ;;  %v413_v34 = vld [vmem:[%s1449_s2 + $0x2c8] sm:$0xff]  ;;  %v415_v35 = vld [vmem:[%s1449_s2 + $0x2d8] sm:$0xff]  ;;  %v750_v36 = vpack.c.bf16 %v359_v27, %v357_v26 }
  0x1e   :  { %v356_v37 = vld [vmem:[%s1449_s2 + $0x100] sm:$0xff]  ;;  %v358_v38 = vld [vmem:[%s1449_s2 + $0x110] sm:$0xff]  ;;  %v361_v39 = vld [vmem:[%s1449_s2 + $0x128] sm:$0xff]  ;;  %v806_v41 = vpack.c.bf16 %v415_v35, %v413_v34 }
  0x1f   :  { %853 = vset.pattern.permute.xlu0 %v880_v2  ;;  %848 = vset.pattern.permute.xlu1 %v886_v32  ;;  %v363_v40 = vld [vmem:[%s1449_s2 + $0x138] sm:$0xff]  ;;  %v412_v42 = vld [vmem:[%s1449_s2 + $0x2c0] sm:$0xff]  ;;  %v414_v43 = vld [vmem:[%s1449_s2 + $0x2d0] sm:$0xff]  ;;  %v752_v44 = vpack.c.bf16 %v358_v38, %v356_v37 }
  0x20   :  { %745 = vmatpush1.bf16.msra.mxu1 %v744_v20  ;;  %249 = vperm.xlu1 %848, %v924_v0   ;;  %v804_v0 = vpack.c.bf16 %v410_v31, %v408_v30  ;;  %v417_v45 = vld [vmem:[%s1449_s2 + $0x2e8] sm:$0xff]  ;;  %v419_v46 = vld [vmem:[%s1449_s2 + $0x2f8] sm:$0xff]  ;;  %v754_v47 = vpack.c.bf16 %v363_v40, %v361_v39  ;;  %v360_v48 = vld [vmem:[%s1449_s2 + $0x120] sm:$0xff]  ;;  %v808_v52 = vpack.c.bf16 %v414_v43, %v412_v42  ;;  %v23_v39 = vlaneseq }
  0x21   :  { %747 = vmatprep.subr.bf16.mxu1 %v746_v23  ;;  %801 = vmatpush1.bf16.msra.mxu0 %v800_v28  ;;  %v362_v49 = vld [vmem:[%s1449_s2 + $0x130] sm:$0xff]  ;;  %v365_v50 = vld [vmem:[%s1449_s2 + $0x148] sm:$0xff]  ;;  %v367_v51 = vld [vmem:[%s1449_s2 + $0x158] sm:$0xff]  ;;  %v810_v53 = vpack.c.bf16 %v419_v46, %v417_v45  ;;  %v887_v45 = vmov 0.0  }
  0x22   :  { %803 = vmatprep.subr.bf16.mxu0 %v802_v29  ;;  %v416_v54 = vld [vmem:[%s1449_s2 + $0x2e0] sm:$0xff]  ;;  %v418_v55 = vld [vmem:[%s1449_s2 + $0x2f0] sm:$0xff]  ;;  %v756_v56 = vpack.c.bf16 %v362_v49, %v360_v48  ;;  %v421_v57 = vld [vmem:[%s1449_s2 + $0x308] sm:$0xff]  ;;  %v758_v59 = vpack.c.bf16 %v367_v51, %v365_v50  ;;  %v1268_v40 = vand.u32 127, %v23_v39 }
  0x23   :  { %v423_v58 = vld [vmem:[%s1449_s2 + $0x318] sm:$0xff]  ;;  %v364_v60 = vld [vmem:[%s1449_s2 + $0x140] sm:$0xff]  ;;  %v366_v61 = vld [vmem:[%s1449_s2 + $0x150] sm:$0xff]  ;;  %v812_v1 = vpack.c.bf16 %v418_v55, %v416_v54 }
  0x24   :  { %749 = vmatpush1.bf16.msra.mxu1 %v748_v33  ;;  %849 = vset.pattern.permute.xlu1 %v885_v17  ;;  %v369_v62 = vld [vmem:[%s1449_s2 + $0x168] sm:$0xff]  ;;  %v371_v63 = vld [vmem:[%s1449_s2 + $0x178] sm:$0xff]  ;;  %v814_v3 = vpack.c.bf16 %v423_v58, %v421_v57  ;;  %v420_v4 = vld [vmem:[%s1449_s2 + $0x300] sm:$0xff]  ;;  %v760_v6 = vpack.c.bf16 %v366_v61, %v364_v60  ;;  %v1277_v42 = vadd.s32 384, %v1268_v40 }
  0x25   :  { %751 = vmatprep.subr.bf16.mxu1 %v750_v36  ;;  %214 = vperm.xlu1 %849, %v957_v13   ;;  %v422_v5 = vld [vmem:[%s1449_s2 + $0x310] sm:$0xff]  ;;  %v762_v7 = vpack.c.bf16 %v371_v63, %v369_v62  ;;  %v368_v8 = vld [vmem:[%s1449_s2 + $0x160] sm:$0xff]  ;;  %v373_v10 = vld [vmem:[%s1449_s2 + $0x188] sm:$0xff] }
  0x26   :  { %805 = vmatpush1.bf16.msra.mxu0 %v804_v0  ;;  %v370_v9 = vld [vmem:[%s1449_s2 + $0x170] sm:$0xff]  ;;  %v375_v11 = vld [vmem:[%s1449_s2 + $0x198] sm:$0xff]  ;;  %v816_v14 = vpack.c.bf16 %v422_v5, %v420_v4  ;;  %v425_v16 = vld [vmem:[%s1449_s2 + $0x328] sm:$0xff]  ;;  %v1271_v0 = vadd.s32 128, %v1268_v40 }
  0x27   :  { %807 = vmatprep.subr.bf16.mxu0 %v806_v41  ;;  %v764_v15 = vpack.c.bf16 %v370_v9, %v368_v8  ;;  %v766_v17 = vpack.c.bf16 %v375_v11, %v373_v10  ;;  %v372_v18 = vld [vmem:[%s1449_s2 + $0x180] sm:$0xff]  ;;  %v374_v19 = vld [vmem:[%s1449_s2 + $0x190] sm:$0xff]  ;;  %v427_v26 = vld [vmem:[%s1448_s1 + $0x8] sm:$0xff]  ;;  %v1274_v41 = vadd.s32 256, %v1268_v40 }
  0x28   :  { %753 = vmatpush1.bf16.msra.mxu1 %v752_v44  ;;  %v424_v20 = vld [vmem:[%s1449_s2 + $0x320] sm:$0xff]  ;;  %v768_v21 = vpack.c.bf16 %v374_v19, %v372_v18  ;;  %v378_v24 = vld [vmem:[%s1449_s2 + $0x1b0] sm:$0xff]  ;;  %v381_v27 = vld [vmem:[%s1449_s2 + $0x1c8] sm:$0xff] }
  0x29   :  { %755 = vmatprep.subr.bf16.mxu1 %v754_v47  ;;  %851 = vset.pattern.permute.xlu1 %v886_v32  ;;  %v376_v22 = vld [vmem:[%s1449_s2 + $0x1a0] sm:$0xff]  ;;  %v382_v31 = vld [vmem:[%s1449_s2 + $0x1d0] sm:$0xff]  ;;  %v385_v32 = vld [vmem:[%s1449_s2 + $0x1e8] sm:$0xff] }
  0x2a   :  { %809 = vmatpush1.bf16.msra.mxu0 %v808_v52  ;;  %252 = vperm.xlu1 %851, %v957_v13   ;;  %v426_v25 = vld [vmem:[%s1448_s1] sm:$0xff]  ;;  %v772_v28 = vpack.c.bf16 %v378_v24, %v376_v22  ;;  %v387_v33 = vld [vmem:[%s1449_s2 + $0x1f8] sm:$0xff]  ;;  %v386_v37 = vld [vmem:[%s1449_s2 + $0x1f0] sm:$0xff] }
  0x2b   :  { %811 = vmatprep.subr.bf16.mxu0 %v810_v53  ;;  %431 = vperm.xlu0 %853, %v426_v25   ;;  %v380_v30 = vld [vmem:[%s1449_s2 + $0x1c0] sm:$0xff]  ;;  %v778_v35 = vpack.c.bf16 %v387_v33, %v385_v32 }
  0x2c   :  { %757 = vmatpush1.bf16.msra.mxu1 %v756_v56  ;;  %v776_v34 = vpack.c.bf16 %v382_v31, %v380_v30  ;;  %v384_v36 = vld [vmem:[%s1449_s2 + $0x1e0] sm:$0xff] }
  0x2d   :  { %759 = vmatprep.subr.bf16.mxu1 %v758_v59  ;;  %v780_v38 = vpack.c.bf16 %v386_v37, %v384_v36 }
  0x2e   :  { %813 = vmatpush1.bf16.msra.mxu0 %v812_v1  ;;  %852 = vset.pattern.permute.xlu1 %v884_v12  ;;  %v379_v12 = vld [vmem:[%s1449_s2 + $0x1b8] sm:$0xff] }
  0x2f   :  { %815 = vmatprep.subr.bf16.mxu0 %v814_v3  ;;  %290 = vperm.xlu1 %852, %v957_v13   ;;  %v377_v13 = vld [vmem:[%s1449_s2 + $0x1a8] sm:$0xff] }
  0x30   :  { %761 = vmatpush1.bf16.msra.mxu1 %v760_v6  ;;  %v770_v23 = vpack.c.bf16 %v379_v12, %v377_v13 }
  0x31   :  { %763 = vmatprep.subr.bf16.mxu1 %v762_v7 }
  0x32   :  { %817 = vmatpush1.bf16.msra.mxu0 %v816_v14 }
  0x33   :  { %574 = vmatprep.subr.mxu0 %v425_v16  ;;  %854 = vset.pattern.permute.xlu1 %v880_v2  ;;  %v383_v2 = vld [vmem:[%s1449_s2 + $0x1d8] sm:$0xff] }
  0x34   :  { %765 = vmatpush1.bf16.msra.mxu1 %v764_v15  ;;  %436 = vperm.xlu1 %854, %v427_v26   ;;  %v774_v29 = vpack.c.bf16 %v383_v2, %v381_v27 }
  0x35   :  { %767 = vmatprep.subr.bf16.mxu1 %v766_v17 }
  0x36   :  { %575 = vmatpush1.msra.mxu0 %v424_v20 }
  0x38   :  { %769 = vmatpush1.bf16.msra.mxu1 %v768_v21 }
  0x39   :  { %771 = vmatprep.subr.bf16.mxu1 %v770_v23 }
  0x3c   :  { %773 = vmatpush1.bf16.msra.mxu1 %v772_v28 }
  0x3d   :  { %775 = vmatprep.subr.bf16.mxu1 %v774_v29 }
  0x40   :  { %777 = vmatpush1.bf16.msra.mxu1 %v776_v34 }
  0x41   :  { %779 = vmatprep.subr.bf16.mxu1 %v778_v35 }
  0x44   :  { %781 = vmatpush1.bf16.msra.mxu1 %v780_v38 }
  0x81   :  { %v98_v43 = vpop.permute.xlu1 %97  ;;  %v30_v44 = vpop.permute.xlu0 %29 }
  0x82   :  { %vm102_vm0 = vcmp.eq.s32.totalorder %v1268_v40, %v98_v43  ;;  %vm103_vm1 = vcmp.eq.s32.totalorder %v1271_v0, %v98_v43  ;;  %vm104_vm2 = vcmp.eq.s32.totalorder %v1274_v41, %v98_v43  ;;  %vm105_vm3 = vcmp.eq.s32.totalorder %v1277_v42, %v98_v43 }
  0x83   :  { %vm34_vm4 = vcmp.eq.s32.totalorder %v1268_v40, %v30_v44  ;;  %vm35_vm5 = vcmp.eq.s32.totalorder %v1271_v0, %v30_v44  ;;  %vm36_vm6 = vcmp.eq.s32.totalorder %v1274_v41, %v30_v44  ;;  %vm37_vm7 = vcmp.eq.s32.totalorder %v1277_v42, %v30_v44 }
  0x84   :  { %v668_v46 = vsel %vm102_vm0, 1.0, %v887_v45  ;;  %v669_v47 = vsel %vm103_vm1, 1.0, %v887_v45  ;;  %v670_v48 = vsel %vm104_vm2, 1.0, %v887_v45  ;;  %v671_v49 = vsel %vm105_vm3, 1.0, %v887_v45 }
  0x85   :  { %v652_v50 = vsel %vm34_vm4, 1.0, %v887_v45  ;;  %v653_v51 = vsel %vm35_vm5, 1.0, %v887_v45  ;;  %v654_v52 = vsel %vm36_vm6, 1.0, %v887_v45  ;;  %v655_v55 = vsel %vm37_vm7, 1.0, %v887_v45 }
  0x86   :  { %v33_v53 = vpop.permute.xlu1 %32  ;;  %v60_v54 = vpop.permute.xlu0 %59 }
  0x87   :  { %vm38_vm8 = vcmp.eq.s32.totalorder %v1268_v40, %v33_v53  ;;  %vm39_vm9 = vcmp.eq.s32.totalorder %v1271_v0, %v33_v53  ;;  %vm40_vm10 = vcmp.eq.s32.totalorder %v1274_v41, %v33_v53  ;;  %vm41_vm11 = vcmp.eq.s32.totalorder %v1277_v42, %v33_v53 }
  0x88   :  { %v656_v56 = vsel %vm38_vm8, 1.0, %v887_v45  ;;  %v657_v57 = vsel %vm39_vm9, 1.0, %v887_v45  ;;  %v658_v58 = vsel %vm40_vm10, 1.0, %v887_v45  ;;  %vm64_vm12 = vcmp.eq.s32.totalorder %v1268_v40, %v60_v54 }
  0x89   :  { %vm65_vm13 = vcmp.eq.s32.totalorder %v1271_v0, %v60_v54  ;;  %vm66_vm14 = vcmp.eq.s32.totalorder %v1274_v41, %v60_v54  ;;  %vm67_vm15 = vcmp.eq.s32.totalorder %v1277_v42, %v60_v54  ;;  %v660_v59 = vsel %vm64_vm12, 1.0, %v887_v45 }
  0x8a   :  { %v661_v60 = vsel %vm65_vm13, 1.0, %v887_v45  ;;  %v662_v61 = vsel %vm66_vm14, 1.0, %v887_v45  ;;  %v663_v62 = vsel %vm67_vm15, 1.0, %v887_v45  ;;  %v88_v63 = vadd.f32 %v660_v59, %v652_v50 }
  0x8b   :  { %v89_v1 = vadd.f32 %v661_v60, %v653_v51  ;;  %v90_v3 = vadd.f32 %v662_v61, %v654_v52  ;;  %v91_v4 = vadd.f32 %v663_v62, %v655_v55  ;;  %v63_v5 = vpop.permute.xlu1 %62  ;;  %v136_v6 = vpop.permute.xlu0 %135  ;;  %v659_v11 = vsel %vm41_vm11, 1.0, %v887_v45 }
  0x8c   :  { %vm68_vm0 = vcmp.eq.s32.totalorder %v1268_v40, %v63_v5  ;;  %vm69_vm1 = vcmp.eq.s32.totalorder %v1271_v0, %v63_v5  ;;  %vm70_vm2 = vcmp.eq.s32.totalorder %v1274_v41, %v63_v5  ;;  %vm71_vm3 = vcmp.eq.s32.totalorder %v1277_v42, %v63_v5 }
  0x8d   :  { %v664_v7 = vsel %vm68_vm0, 1.0, %v887_v45  ;;  %v665_v8 = vsel %vm69_vm1, 1.0, %v887_v45  ;;  %v666_v9 = vsel %vm70_vm2, 1.0, %v887_v45  ;;  %v667_v10 = vsel %vm71_vm3, 1.0, %v887_v45 }
  0x8e   :  { %v92_v14 = vadd.f32 %v664_v7, %v656_v56  ;;  %v93_v15 = vadd.f32 %v665_v8, %v657_v57  ;;  %v94_v16 = vadd.f32 %v666_v9, %v658_v58  ;;  %v95_v17 = vadd.f32 %v667_v10, %v659_v11 }
  0x8f   :  { %v126_v18 = vadd.f32 %v668_v46, %v88_v63  ;;  %v127_v19 = vadd.f32 %v669_v47, %v89_v1  ;;  %v128_v13 = vadd.f32 %v670_v48, %v90_v3  ;;  %vm140_vm4 = vcmp.eq.s32.totalorder %v1268_v40, %v136_v6  ;;  %v139_v20 = vpop.permute.xlu0 %138 }
  0x90   :  { %vm141_vm5 = vcmp.eq.s32.totalorder %v1271_v0, %v136_v6  ;;  %vm142_vm6 = vcmp.eq.s32.totalorder %v1274_v41, %v136_v6  ;;  %vm143_vm7 = vcmp.eq.s32.totalorder %v1277_v42, %v136_v6  ;;  %v101_v12 = vpop.permute.xlu1 %100  ;;  %v129_v21 = vadd.f32 %v671_v49, %v91_v4 }
  0x91   :  { %v676_v22 = vsel %vm140_vm4, 1.0, %v887_v45  ;;  %v677_v23 = vsel %vm141_vm5, 1.0, %v887_v45  ;;  %v678_v24 = vsel %vm142_vm6, 1.0, %v887_v45  ;;  %v679_v25 = vsel %vm143_vm7, 1.0, %v887_v45 }
  0x92   :  { %v164_v26 = vadd.f32 %v676_v22, %v126_v18  ;;  %v1329_v27 = vadd.f32 %v677_v23, %v127_v19  ;;  %v166_v2 = vadd.f32 %v678_v24, %v128_v13  ;;  %vm106_vm8 = vcmp.eq.s32.totalorder %v1268_v40, %v101_v12 }
  0x93   :  { %vm107_vm9 = vcmp.eq.s32.totalorder %v1271_v0, %v101_v12  ;;  %vm108_vm10 = vcmp.eq.s32.totalorder %v1274_v41, %v101_v12  ;;  %vm109_vm11 = vcmp.eq.s32.totalorder %v1277_v42, %v101_v12  ;;  %v672_v28 = vsel %vm106_vm8, 1.0, %v887_v45 }
  0x94   :  { %v673_v29 = vsel %vm107_vm9, 1.0, %v887_v45  ;;  %v674_v30 = vsel %vm108_vm10, 1.0, %v887_v45  ;;  %v675_v31 = vsel %vm109_vm11, 1.0, %v887_v45  ;;  %v130_v32 = vadd.f32 %v672_v28, %v92_v14  ;;  %v177_v37 = vpop.permute.xlu0 %176 }
  0x95   :  { %v131_v33 = vadd.f32 %v673_v29, %v93_v15  ;;  %v132_v34 = vadd.f32 %v674_v30, %v94_v16  ;;  %v133_v35 = vadd.f32 %v675_v31, %v95_v17  ;;  %v174_v36 = vpop.permute.xlu1 %173  ;;  %vm144_vm12 = vcmp.eq.s32.totalorder %v1268_v40, %v139_v20 }
  0x96   :  { %vm145_vm13 = vcmp.eq.s32.totalorder %v1271_v0, %v139_v20  ;;  %vm146_vm14 = vcmp.eq.s32.totalorder %v1274_v41, %v139_v20  ;;  %vm147_vm15 = vcmp.eq.s32.totalorder %v1277_v42, %v139_v20  ;;  %v680_v38 = vsel %vm144_vm12, 1.0, %v887_v45 }
  0x97   :  { %v681_v43 = vsel %vm145_vm13, 1.0, %v887_v45  ;;  %v682_v44 = vsel %vm146_vm14, 1.0, %v887_v45  ;;  %v683_v46 = vsel %vm147_vm15, 1.0, %v887_v45  ;;  %v168_v47 = vadd.f32 %v680_v38, %v130_v32 }
  0x98   :  { %v169_v48 = vadd.f32 %v681_v43, %v131_v33  ;;  %v170_v49 = vadd.f32 %v682_v44, %v132_v34  ;;  %v171_v50 = vadd.f32 %v683_v46, %v133_v35  ;;  %vm182_vm0 = vcmp.eq.s32.totalorder %v1268_v40, %v177_v37 }
  0x99   :  { %vm183_vm1 = vcmp.eq.s32.totalorder %v1271_v0, %v177_v37  ;;  %vm184_vm2 = vcmp.eq.s32.totalorder %v1274_v41, %v177_v37  ;;  %vm185_vm3 = vcmp.eq.s32.totalorder %v1277_v42, %v177_v37  ;;  %v688_v51 = vsel %vm182_vm0, 1.0, %v887_v45 }
  0x9a   :  { %v689_v52 = vsel %vm183_vm1, 1.0, %v887_v45  ;;  %v690_v53 = vsel %vm184_vm2, 1.0, %v887_v45  ;;  %v691_v54 = vsel %vm185_vm3, 1.0, %v887_v45  ;;  %v212_v55 = vpop.permute.xlu1 %211  ;;  %v167_v56 = vadd.f32 %v679_v25, %v129_v21  ;;  %v288_v1 = vpop.permute.xlu0 %287 }
  0x9b   :  { %v206_v57 = vadd.f32 %v688_v51, %v168_v47  ;;  %v207_v58 = vadd.f32 %v689_v52, %v169_v48  ;;  %v208_v59 = vadd.f32 %v690_v53, %v170_v49  ;;  %vm178_vm4 = vcmp.eq.s32.totalorder %v1268_v40, %v174_v36 }
  0x9c   :  { %vm179_vm5 = vcmp.eq.s32.totalorder %v1271_v0, %v174_v36  ;;  %vm180_vm6 = vcmp.eq.s32.totalorder %v1274_v41, %v174_v36  ;;  %vm181_vm7 = vcmp.eq.s32.totalorder %v1277_v42, %v174_v36  ;;  %v209_v60 = vadd.f32 %v691_v54, %v171_v50 }
  0x9d   :  { %v684_v61 = vsel %vm178_vm4, 1.0, %v887_v45  ;;  %v685_v62 = vsel %vm179_vm5, 1.0, %v887_v45  ;;  %v686_v63 = vsel %vm180_vm6, 1.0, %v887_v45  ;;  %v687_v3 = vsel %vm181_vm7, 1.0, %v887_v45 }
  0x9e   :  { %v202_v4 = vadd.f32 %v684_v61, %v164_v26  ;;  %v204_v5 = vadd.f32 %v686_v63, %v166_v2  ;;  %vm216_vm8 = vcmp.eq.s32.totalorder %v1268_v40, %v212_v55  ;;  %vm217_vm9 = vcmp.eq.s32.totalorder %v1271_v0, %v212_v55 }
  0x9f   :  { %vm218_vm10 = vcmp.eq.s32.totalorder %v1274_v41, %v212_v55  ;;  %vm219_vm11 = vcmp.eq.s32.totalorder %v1277_v42, %v212_v55  ;;  %v692_v6 = vsel %vm216_vm8, 1.0, %v887_v45  ;;  %v250_v7 = vpop.permute.xlu1 %249  ;;  %vm292_vm14 = vcmp.eq.s32.totalorder %v1268_v40, %v288_v1 }
  0xa0   :  { %v694_v8 = vsel %vm218_vm10, 1.0, %v887_v45  ;;  %vm254_vm12 = vcmp.eq.s32.totalorder %v1268_v40, %v250_v7  ;;  %vm256_vm13 = vcmp.eq.s32.totalorder %v1274_v41, %v250_v7  ;;  %v240_v9 = vadd.f32 %v692_v6, %v202_v4  ;;  %v615_v6 = vld [vmem:[%s1451_s4] sm:$0x3] }
  0xa1   :  { %v242_v10 = vadd.f32 %v694_v8, %v204_v5  ;;  %v700_v11 = vsel %vm254_vm12, 1.0, %v887_v45  ;;  %v702_v14 = vsel %vm256_vm13, 1.0, %v887_v45  ;;  %vm294_vm15 = vcmp.eq.s32.totalorder %v1274_v41, %v288_v1 }
  0xa2   :  { %v203_v15 = vadd.f32 %v685_v62, %v1329_v27  ;;  %v693_v16 = vsel %vm217_vm9, 1.0, %v887_v45  ;;  %vm255_vm0 = vcmp.eq.s32.totalorder %v1271_v0, %v250_v7  ;;  %vm293_vm1 = vcmp.eq.s32.totalorder %v1271_v0, %v288_v1 }
  0xa3   :  { %v701_v17 = vsel %vm255_vm0, 1.0, %v887_v45  ;;  %v205_v18 = vadd.f32 %v687_v3, %v167_v56  ;;  %v695_v19 = vsel %vm219_vm11, 1.0, %v887_v45  ;;  %vm454_vm2 = vcmask 195584  }
  0xa4   :  { %v215_v13 = vpop.permute.xlu1 %214  ;;  %v241_v12 = vadd.f32 %v693_v16, %v203_v15  ;;  %vm257_vm3 = vcmp.eq.s32.totalorder %v1277_v42, %v250_v7  ;;  %vm295_vm4 = vcmp.eq.s32.totalorder %v1277_v42, %v288_v1  ;;  %v278_v20 = vadd.f32 %v700_v11, %v240_v9 }
  0xa5   :  { %vm220_vm5 = vcmp.eq.s32.totalorder %v1268_v40, %v215_v13  ;;  %vm221_vm6 = vcmp.eq.s32.totalorder %v1271_v0, %v215_v13  ;;  %vm222_vm7 = vcmp.eq.s32.totalorder %v1274_v41, %v215_v13  ;;  %vm223_vm8 = vcmp.eq.s32.totalorder %v1277_v42, %v215_v13 }
  0xa6   :  { %v696_v21 = vsel %vm220_vm5, 1.0, %v887_v45  ;;  %v697_v22 = vsel %vm221_vm6, 1.0, %v887_v45  ;;  %v698_v23 = vsel %vm222_vm7, 1.0, %v887_v45  ;;  %v699_v24 = vsel %vm223_vm8, 1.0, %v887_v45 }
  0xa7   :  { %v244_v25 = vadd.f32 %v696_v21, %v206_v57  ;;  %v245_v26 = vadd.f32 %v697_v22, %v207_v58  ;;  %v246_v27 = vadd.f32 %v698_v23, %v208_v59  ;;  %v709_v2 = vsel %vm293_vm1, 1.0, %v887_v45 }
  0xa8   :  { %v247_v28 = vadd.f32 %v699_v24, %v209_v60  ;;  %v279_v29 = vadd.f32 %v701_v17, %v241_v12  ;;  %v243_v30 = vadd.f32 %v695_v19, %v205_v18  ;;  %v703_v31 = vsel %vm257_vm3, 1.0, %v887_v45 }
  0xa9   :  { %v711_v32 = vsel %vm295_vm4, 1.0, %v887_v45  ;;  %v708_v33 = vsel %vm292_vm14, 1.0, %v887_v45  ;;  %v280_v34 = vadd.f32 %v702_v14, %v242_v10  ;;  %v710_v35 = vsel %vm294_vm15, 1.0, %v887_v45  ;;  %v253_v36 = vpop.permute.xlu1 %252 }
  0xaa   :  { %v317_v37 = vadd.f32 %v709_v2, %v279_v29  ;;  %v281_v38 = vadd.f32 %v703_v31, %v243_v30  ;;  %v316_v43 = vadd.f32 %v708_v33, %v278_v20  ;;  %vm258_vm9 = vcmp.eq.s32.totalorder %v1268_v40, %v253_v36 }
  0xab   :  { %v318_v44 = vadd.f32 %v710_v35, %v280_v34  ;;  %vm259_vm10 = vcmp.eq.s32.totalorder %v1271_v0, %v253_v36  ;;  %vm260_vm11 = vcmp.eq.s32.totalorder %v1274_v41, %v253_v36  ;;  %vm261_vm12 = vcmp.eq.s32.totalorder %v1277_v42, %v253_v36 }
  0xac   :  { %525 = vmatprep.mubr.f32.mxu1 %v317_v37  ;;  %v319_v46 = vadd.f32 %v711_v32, %v281_v38  ;;  %v704_v47 = vsel %vm258_vm9, 1.0, %v887_v45  ;;  %v705_v48 = vsel %vm259_vm10, 1.0, %v887_v45  ;;  %v706_v49 = vsel %vm260_vm11, 1.0, %v887_v45 }
  0xad   :  { %526 = vmatmul.mubr.f32.vlgmr.msra.gmra.mrb[0].mxu1 %v316_v43  ;;  %v707_v50 = vsel %vm261_vm12, 1.0, %v887_v45  ;;  %v283_v53 = vadd.f32 %v705_v48, %v245_v26  ;;  %v282_v54 = vadd.f32 %v704_v47, %v244_v25  ;;  %v284_v55 = vadd.f32 %v706_v49, %v246_v27 }
  0xae   :  { %716 = vmatprep.mubr.msk.f32.mxu0 %vm454_vm2, %v319_v46  ;;  %v285_v51 = vadd.f32 %v707_v50, %v247_v28  ;;  %v291_v52 = vpop.permute.xlu1 %290  ;;  %vm632_vm1 = vcmask 64512  }
  0xaf   :  { %603 = vmatmul.mubr.f32.vlgmr.msra.gmra.mrb[0].mxu0 %v318_v44  ;;  %vm296_vm13 = vcmp.eq.s32.totalorder %v1268_v40, %v291_v52  ;;  %vm297_vm14 = vcmp.eq.s32.totalorder %v1271_v0, %v291_v52  ;;  %vm298_vm15 = vcmp.eq.s32.totalorder %v1274_v41, %v291_v52  ;;  %vm299_vm0 = vcmp.eq.s32.totalorder %v1277_v42, %v291_v52  ;;  %v428_v41 = vld [vmem:[%s1450_s3] sm:$0x3]  ;;  %s888_s3 = smov [#allocation2]  }
  0xb0   :  { %v715_v56 = vsel %vm299_vm0, 1.0, %v887_v45  ;;  %v713_v57 = vsel %vm297_vm14, 1.0, %v887_v45  ;;  %v712_v58 = vsel %vm296_vm13, 1.0, %v887_v45  ;;  %v714_v59 = vsel %vm298_vm15, 1.0, %v887_v45  ;;  %v432_v45 = vpop.permute.xlu0 %431  ;;  %s641_s4 = sshll.u32 %s888_s3, 4  ;;  %s642_s4 = int_to_ptr.vmem [resolvable:$true] %s641_s4 }
  0xb1   :  { %v321_v60 = vadd.f32 %v713_v57, %v283_v53  ;;  %v323_v61 = vadd.f32 %v715_v56, %v285_v51  ;;  %v320_v62 = vadd.f32 %v712_v58, %v282_v54  ;;  %v322_v63 = vadd.f32 %v714_v59, %v284_v55  ;;  %s855_s24 = scalar_lea.vmem %s642_s4, 512  ;;  %p860_p1 = scmp.lt.s32.totalorder %s642_s4, %s642_s4 }
  0xb2   :  { %v441_v40 = vshrl.u32 %v23_v39, 7  ;;  %p856_p0 = scmp.ne.s32.totalorder %s642_s4, %s855_s24  ;;  %p861_p2 = scmp.lt.s32.totalorder %s855_s24, %s855_s24 }
  0xb3   :  { %531 = vmatprep.mubr.f32.mxu1 %v321_v60  ;;  %717 = vmatprep.mubr.msk.f32.mxu0 %vm454_vm2, %v323_v61  ;;  %v437_v39 = vpop.permute.xlu1 %436 }
  0xb4   :  { %532 = vmatmul.mubr.f32.gmra.mrb[2].mxu1 %v320_v62  ;;  %609 = vmatmul.mubr.f32.gmra.mrb[2].mxu0 %v322_v63  ;;  %v442_v0 = vsub.s32 0, %v441_v40  ;;  %v446_v42 = vsub.s32 1, %v441_v40  ;;  %p862_p3 = por %p861_p2, %p860_p1 }
  0xb6   :  { %v443_v1 = vrot.slane %v428_v41, %v442_v0  ;;  %v447_v3 = vrot.slane %v428_v41, %v446_v42  ;;  %v620_v9 = vrot.slane %v615_v6, %v442_v0  ;;  %v624_v15 = vrot.slane %v615_v6, %v446_v42  ;;  %p863_p4 = pnand %p862_p3, %p856_p0 }
  0xb8   :  { %v450_v4 = vmul.f32 %v443_v1, %v432_v45  ;;  %v451_v5 = vmul.f32 %v447_v3, %v432_v45  ;;  %v452_v19 = vmul.f32 %v443_v1, %v437_v39  ;;  %v453_v12 = vmul.f32 %v447_v3, %v437_v39 }
 0x180   :  { %v527_v7 = vpop.f32.mrb[0].mxu1 }
 0x181   :  { %v528_v8 = vadd.f32 %v527_v7, %v450_v4  ;;  %v529_v10 = vpop.f32.mrb[1].mxu1 }
 0x182   :  { %v604_v11 = vpop.f32.mrb[0].mxu0  ;;  %v530_v14 = vadd.f32 %v529_v10, %v451_v5 }
 0x183   :  { %v605_v16 = vadd.f32 %v604_v11, %v528_v8  ;;  %v606_v17 = vpop.f32.mrb[1].mxu0 }
 0x184   :  { %v607_v18 = vadd.f32 %v606_v17, %v530_v14 }
 0x185   :  { %v627_v13 = vadd.f32 %v620_v9, %v605_v16 }
 0x186   :  { %v628_v20 = vadd.f32 %v624_v15, %v607_v18 }
 0x187   :  { %631 = vst [vmem:[#allocation2] sm:$0xff] %v627_v13  ;;  %v533_v21 = vpop.f32.mrb[2].mxu1  ;;  %v610_v22 = vpop.f32.mrb[2].mxu0 }
 0x188   :  { %633 = vst.msk [vmem:[#allocation2 + $0x8] sm:$0xff] %vm632_vm1, %v628_v20  ;;  %v534_v23 = vadd.f32 %v533_v21, %v452_v19  ;;  %v535_v24 = vpop.f32.mrb[3].mxu1  ;;  %v612_v25 = vpop.f32.mrb[3].mxu0 }
 0x189   :  { %v536_v26 = vadd.f32 %v535_v24, %v453_v12 }
 0x18a   :  { %v611_v27 = vadd.f32 %v610_v22, %v534_v23 }
 0x18b   :  { %v613_v2 = vadd.f32 %v612_v25, %v536_v26 }
 0x18c   :  { %v629_v28 = vadd.f32 %v620_v9, %v611_v27 }
 0x18d   :  { %v630_v29 = vadd.f32 %v624_v15, %v613_v2 }
 0x18e   :  { %634 = vst [vmem:[#allocation2 + $0x10] sm:$0xff] %v629_v28 }
 0x18f   :  { %635 = vst.msk [vmem:[#allocation2 + $0x18] sm:$0xff] %vm632_vm1, %v630_v29 }
 0x190   :  { %866 = shalt.err (!%p863_p4)
}
 0x191   :  { %s867_s27 = scalar_lea.hbm %s1452_s5, 512 }
 0x192   :  { %p868_p5 = scmp.ne.s32.totalorder %s1452_s5, %s867_s27  ;;  %p871_p6 = scmp.lt.u32.totalorder %s867_s27, %s1452_s5 }
 0x194   :  { %p873_p7 = pnand %p871_p6, %p868_p5 }
 0x196   :  { %876 = shalt.err (!%p873_p7)
}
 0x197   :  { %s889_s7 = smov 256   ;;  %s890_s8 = smov 16  }
 0x198   :  { %647 = dma.vmem_to_hbm [thread:$0]  %s642_s4, 512, %s1452_s5, [#allocation3], %s889_s7, %s889_s7, %s890_s8  }
 0x199   :  { %877 = dma.done.wait [#allocation3], 512  }
 0x19a   :  { %878 = vsyncadd [#allocation3], 4294966784 }
 0x19b   :  { %651 = vsyncpa [#allocation3], 1 }

</bundles_post_ra>
